<compile_context>
chip_gen: v6e
topology: v6e:2x2x1
jax: 0.10.0
libtpu: 0.0.40
codegen_flags: <defaults>
</compile_context>

<pallas_src>
import functools
import math

import jax
import jax.numpy as jnp
from jax.experimental import pallas as pl


# ----------------------------------------------------------------------------
# Pallas kernels
# ----------------------------------------------------------------------------
def _conv_pool_relu_kernel(p_ref, w_ref, b_ref, o_ref):
    """Fused conv (im2col matmul) + bias + 2x2 max-pool + relu.

    p_ref: (4, M, K) pooling-ordered im2col patches (q = position inside the
                     2x2 pooling window, M = B*Hp*Wp pooled output positions).
    w_ref: (K, Cout) conv weight flattened in (kH, kW, Cin) feature order.
    b_ref: (1, Cout)
    o_ref: (M, Cout) = relu(maxpool2x2(conv(x)) + b)
    """
    w = w_ref[...]
    m = jnp.dot(p_ref[0], w, preferred_element_type=jnp.float32)
    for q in range(1, 4):
        m = jnp.maximum(m, jnp.dot(p_ref[q], w, preferred_element_type=jnp.float32))
    o_ref[...] = jnp.maximum(m + b_ref[...], 0.0)


def _mlp_loc_kernel(x_ref, w1_ref, b1_ref, w2_ref, b2_ref, o_ref):
    """fc_loc head: relu(x @ w1 + b1) @ w2 + b2 ; hidden stays in VMEM."""
    h = jnp.dot(x_ref[...], w1_ref[...], preferred_element_type=jnp.float32) + b1_ref[...]
    h = jnp.maximum(h, 0.0)
    o_ref[...] = jnp.dot(h, w2_ref[...], preferred_element_type=jnp.float32) + b2_ref[...]


def _mlp_head_kernel(x_ref, w1_ref, b1_ref, w2_ref, b2_ref, o_ref):
    """classifier head: log_softmax(relu(x @ w1 + b1) @ w2 + b2, axis=-1)."""
    h = jnp.dot(x_ref[...], w1_ref[...], preferred_element_type=jnp.float32) + b1_ref[...]
    h = jnp.maximum(h, 0.0)
    z = jnp.dot(h, w2_ref[...], preferred_element_type=jnp.float32) + b2_ref[...]
    m = jnp.max(z, axis=-1, keepdims=True)
    e = jnp.exp(z - m)
    s = jnp.sum(e, axis=-1, keepdims=True)
    o_ref[...] = z - m - jnp.log(s)


# ----------------------------------------------------------------------------
# pallas_call wrappers (full-array blocks, no manual padding)
# ----------------------------------------------------------------------------
def _conv_call(pq, wm, b):
    Q, M, K = pq.shape
    Cout = wm.shape[1]
    return pl.pallas_call(
        _conv_pool_relu_kernel,
        out_shape=jax.ShapeDtypeStruct((M, Cout), jnp.float32),
        grid=(1,),
        in_specs=[
            pl.BlockSpec((Q, M, K), lambda i: (0, 0, 0)),
            pl.BlockSpec((K, Cout), lambda i: (0, 0)),
            pl.BlockSpec((1, Cout), lambda i: (0, 0)),
        ],
        out_specs=pl.BlockSpec((M, Cout), lambda i: (0, 0)),
    )(pq, wm, b)


def conv_pool_relu(x, wm, b, k):
    """x: (B, H, W, Cin) NHWC -> relu(maxpool2x2(conv_valid(x))): (B, Hp, Wp, Cout).

    The wrapper only does layout (slices/concat, fused by XLA); all compute —
    im2col matmul, bias, 2x2 max-pool, relu — happens in one Pallas kernel.
    """
    B, H, W, Cin = x.shape
    Cout = wm.shape[1]
    Ho, Wo = H - k + 1, W - k + 1
    Hp, Wp = Ho // 2, Wo // 2
    K = k * k * Cin

    # im2col with (kH, kW, Cin) feature order (channels-last).
    taps = [x[:, di:di + Ho, dj:dj + Wo, :] for di in range(k) for dj in range(k)]
    p = jnp.concatenate(taps, axis=-1)                            # (B, Ho, Wo, K)
    # Reorder rows so the 4 members of each 2x2 pooling window live at the same
    # row index of the four q-slices; the kernel pools with a max over q.
    quads = [p[:, pi:pi + 2 * Hp:2, pj:pj + 2 * Wp:2, :]          # (B, Hp, Wp, K)
             for pi in (0, 1) for pj in (0, 1)]
    pq = jnp.stack(quads, axis=0).reshape(4, B * Hp * Wp, K)

    out = _conv_call(pq, wm, b)                                   # (B*Hp*Wp, Cout)
    return out.reshape(B, Hp, Wp, Cout)


def _mlp_call(kernel, x, w1, b1, w2, b2, n_out):
    M, K1 = x.shape
    N1 = w1.shape[1]
    return pl.pallas_call(
        kernel,
        out_shape=jax.ShapeDtypeStruct((M, n_out), jnp.float32),
        grid=(1,),
        in_specs=[
            pl.BlockSpec((M, K1), lambda i: (0, 0)),
            pl.BlockSpec((K1, N1), lambda i: (0, 0)),
            pl.BlockSpec((1, N1), lambda i: (0, 0)),
            pl.BlockSpec((N1, n_out), lambda i: (0, 0)),
            pl.BlockSpec((1, n_out), lambda i: (0, 0)),
        ],
        out_specs=pl.BlockSpec((M, n_out), lambda i: (0, 0)),
    )(x, w1, b1, w2, b2)


def mlp_loc(x, p):
    return _mlp_call(_mlp_loc_kernel, x, p["fc_loc1_w"], p["fc_loc1_b"],
                     p["fc_loc2_w"], p["fc_loc2_b"], 6)


def mlp_head(x, p):
    return _mlp_call(_mlp_head_kernel, x, p["fc1_w"], p["fc1_b"],
                     p["fc2_w"], p["fc2_b"], 10)


# ----------------------------------------------------------------------------
# affine_grid + grid_sample (plain-JAX glue; bilinear, zeros padding,
# align_corners=False — current PyTorch default). NHWC.
# ----------------------------------------------------------------------------
def stn_sample(x, theta):
    B, H, W, C = x.shape
    xs_n = (jnp.arange(W, dtype=jnp.float32) + 0.5) * 2.0 / W - 1.0
    ys_n = (jnp.arange(H, dtype=jnp.float32) + 0.5) * 2.0 / H - 1.0
    gx, gy = jnp.meshgrid(xs_n, ys_n)                                 # (H, W)
    base = jnp.stack([gx, gy, jnp.ones_like(gx)], axis=-1).reshape(1, H * W, 3)
    grid = jnp.einsum("bij,bpj->bpi", theta,
                      jnp.broadcast_to(base, (B, H * W, 3)))          # (B, HW, 2)
    sx, sy = grid[..., 0], grid[..., 1]
    ix = ((sx + 1.0) * W - 1.0) * 0.5
    iy = ((sy + 1.0) * H - 1.0) * 0.5
    x0 = jnp.floor(ix)
    y0 = jnp.floor(iy)
    x1, y1 = x0 + 1.0, y0 + 1.0
    wx1, wy1 = ix - x0, iy - y0
    wx0, wy0 = 1.0 - wx1, 1.0 - wy1

    flat = x.reshape(B, H * W, C)

    def gather(yy, xx):
        valid = (xx >= 0) & (xx <= W - 1) & (yy >= 0) & (yy <= H - 1)
        xi = jnp.clip(xx, 0, W - 1).astype(jnp.int32)
        yi = jnp.clip(yy, 0, H - 1).astype(jnp.int32)
        idx = (yi * W + xi)[:, :, None]                               # (B, HW, 1)
        v = jnp.take_along_axis(flat, jnp.broadcast_to(idx, (B, H * W, C)), axis=1)
        return v * valid[:, :, None].astype(x.dtype)

    v00 = gather(y0, x0)
    v01 = gather(y0, x1)
    v10 = gather(y1, x0)
    v11 = gather(y1, x1)
    out = (v00 * (wy0 * wx0)[..., None] + v01 * (wy0 * wx1)[..., None]
           + v10 * (wy1 * wx0)[..., None] + v11 * (wy1 * wx1)[..., None])
    return out.reshape(B, H, W, C)


# ----------------------------------------------------------------------------
# Parameters (deterministic init; fc_loc[2] gets the identity-transform init
# exactly as in the PyTorch module).  Conv weights stored pre-flattened as
# (kH*kW*Cin, Cout); fc1 / fc_loc1 rows pre-permuted from torch's (C,H,W)
# flatten order to our NHWC (H,W,C) flatten order (pure relabeling of the
# random init, done once at init so the hot path has zero layout ops).
# ----------------------------------------------------------------------------
def init_params(key):
    def uni(k, shape, fan_in):
        bound = 1.0 / math.sqrt(fan_in)
        return jax.random.uniform(k, shape, jnp.float32, -bound, bound)

    def conv_wb(kw, kb, cout, cin, ksz):
        fan_in = cin * ksz * ksz
        w = uni(kw, (cout, cin, ksz, ksz), fan_in)                    # torch layout
        wm = jnp.transpose(w, (2, 3, 1, 0)).reshape(ksz * ksz * cin, cout)
        b = uni(kb, (1, cout), fan_in)
        return wm, b

    ks = jax.random.split(key, 16)
    p = {}
    # main path
    p["conv1_w"], p["conv1_b"] = conv_wb(ks[0], ks[1], 10, 1, 5)
    p["conv2_w"], p["conv2_b"] = conv_wb(ks[2], ks[3], 20, 10, 5)
    fc1 = uni(ks[4], (320, 50), 320)                                  # rows in (C,H,W)
    p["fc1_w"] = fc1.reshape(20, 4, 4, 50).transpose(1, 2, 0, 3).reshape(320, 50)
    p["fc1_b"] = uni(ks[5], (1, 50), 320)
    p["fc2_w"] = uni(ks[6], (50, 10), 50)
    p["fc2_b"] = uni(ks[7], (1, 10), 50)
    # localization path
    p["loc_conv1_w"], p["loc_conv1_b"] = conv_wb(ks[8], ks[9], 8, 1, 7)
    p["loc_conv2_w"], p["loc_conv2_b"] = conv_wb(ks[10], ks[11], 10, 8, 5)
    loc1 = uni(ks[12], (90, 32), 90)                                  # rows in (C,H,W)
    p["fc_loc1_w"] = loc1.reshape(10, 3, 3, 32).transpose(1, 2, 0, 3).reshape(90, 32)
    p["fc_loc1_b"] = uni(ks[13], (1, 32), 90)
    p["fc_loc2_w"] = jnp.zeros((32, 6), jnp.float32)
    p["fc_loc2_b"] = jnp.array([[1.0, 0.0, 0.0, 0.0, 1.0, 0.0]], jnp.float32)
    return p


# ----------------------------------------------------------------------------
# Forward pass (mirrors Net.forward)
# ----------------------------------------------------------------------------
def net_forward(params, x_nchw):
    B = x_nchw.shape[0]
    x = jnp.transpose(x_nchw, (0, 2, 3, 1))                           # NHWC, once

    # --- stn: localization -> theta -> grid_sample ---
    h = conv_pool_relu(x, params["loc_conv1_w"], params["loc_conv1_b"], 7)   # (B,11,11,8)
    h = conv_pool_relu(h, params["loc_conv2_w"], params["loc_conv2_b"], 5)   # (B,3,3,10)
    theta = mlp_loc(h.reshape(B, 90), params).reshape(B, 2, 3)
    xt = stn_sample(x, theta)                                                # (B,28,28,1)

    # --- main classifier ---
    h = conv_pool_relu(xt, params["conv1_w"], params["conv1_b"], 5)          # (B,12,12,10)
    # Dropout2d on conv2 output: identity (eval mode) -> fully fusable.
    h = conv_pool_relu(h, params["conv2_w"], params["conv2_b"], 5)           # (B,4,4,20)
    # F.dropout: identity (eval mode)
    return mlp_head(h.reshape(B, 320), params)                               # (B,10)


if __name__ == "__main__":
    key = jax.random.PRNGKey(0)
    params = init_params(key)
    x = jax.random.normal(jax.random.fold_in(key, 99), (2, 1, 28, 28), jnp.float32)

    # --- self-check 1: fused conv/pool/relu kernel vs plain-JAX reference ---
    kc = jax.random.split(jax.random.fold_in(key, 7), 3)
    p_t = jax.random.normal(kc[0], (4, 30, 25), jnp.float32)
    w_t = jax.random.normal(kc[1], (25, 10), jnp.float32) * 0.2
    b_t = jax.random.normal(kc[2], (1, 10), jnp.float32)
    got = jax.jit(_conv_call)(p_t, w_t, b_t)
    ref = jnp.maximum(
        jnp.max(jnp.einsum("qmk,kn->qmn", p_t, w_t,
                           precision=jax.lax.Precision.HIGHEST), axis=0) + b_t, 0.0)
    assert bool(jnp.allclose(got, ref, rtol=1e-2, atol=1e-2)), "conv kernel mismatch"

    # --- self-check 2: fused fc head kernel vs plain-JAX reference ----------
    hv_t = jax.random.normal(jax.random.fold_in(key, 8), (2, 320), jnp.float32)
    got_h = jax.jit(mlp_head)(hv_t, params)
    hi = jnp.maximum(
        jnp.dot(hv_t, params["fc1_w"], precision=jax.lax.Precision.HIGHEST)
        + params["fc1_b"], 0.0)
    zi = jnp.dot(hi, params["fc2_w"], precision=jax.lax.Precision.HIGHEST) + params["fc2_b"]
    ref_h = jax.nn.log_softmax(zi, axis=-1)
    assert bool(jnp.allclose(got_h, ref_h, rtol=1e-2, atol=1e-2)), "fc head mismatch"

    # --- full forward --------------------------------------------------------
    fwd = jax.jit(functools.partial(net_forward, params))
    out = jax.block_until_ready(fwd(x))

    assert out.shape == (2, 10), out.shape
    assert bool(jnp.all(jnp.isfinite(out)))
    row_sums = jnp.exp(out).sum(axis=1)
    assert bool(jnp.all(jnp.abs(row_sums - 1.0) < 1e-4)), row_sums
    print("KERNEL_OK")
</pallas_src>

<mosaic_0001>
module attributes {stable_mosaic.version = 11 : i64} {
  func.func @_conv_pool_relu_kernel(%arg0: i32, %arg1: memref<4x30x25xf32, #tpu.memory_space<vmem>>, %arg2: memref<25x10xf32, #tpu.memory_space<vmem>>, %arg3: memref<1x10xf32, #tpu.memory_space<vmem>>, %arg4: memref<30x10xf32, #tpu.memory_space<vmem>>) attributes {dimension_semantics = [#tpu.dimension_semantics<arbitrary>], iteration_bounds = array<i64: 1>, scalar_prefetch = 0 : i64, scratch_operands = 0 : i64, tpu.core_type = #tpu.core_type<tc>, window_params = [{pipeline_mode = #tpu.pipeline_mode<synchronous>, transform_indices = @transform_0, window_bounds = array<i64: 4, 30, 25>}, {pipeline_mode = #tpu.pipeline_mode<synchronous>, transform_indices = @transform_1, window_bounds = array<i64: 25, 10>}, {pipeline_mode = #tpu.pipeline_mode<synchronous>, transform_indices = @transform_2, window_bounds = array<i64: 1, 10>}, {pipeline_mode = #tpu.pipeline_mode<synchronous>, transform_indices = @transform_3, window_bounds = array<i64: 30, 10>}]} {
    %c0 = arith.constant 0 : index
    %c0_0 = arith.constant 0 : index
    %0 = vector.load %arg2[%c0, %c0_0] : memref<25x10xf32, #tpu.memory_space<vmem>>, vector<25x10xf32>
    %c0_1 = arith.constant 0 : index
    %c0_2 = arith.constant 0 : index
    %c0_3 = arith.constant 0 : index
    %1 = vector.load %arg1[%c0_1, %c0_2, %c0_3] : memref<4x30x25xf32, #tpu.memory_space<vmem>>, vector<1x30x25xf32>
    %2 = vector.shape_cast %1 : vector<1x30x25xf32> to vector<30x25xf32>
    %cst = arith.constant dense<0.000000e+00> : vector<30x10xf32>
    %3 = tpu.matmul %2, %0, %cst {dimension_numbers = #tpu.dot_dimension_numbers<[1], [0], [0], [1], [0, 0, 1, 1], [], []>} : vector<30x25xf32>, vector<25x10xf32>, vector<30x10xf32> -> vector<30x10xf32>
    %c1 = arith.constant 1 : index
    %c0_4 = arith.constant 0 : index
    %c0_5 = arith.constant 0 : index
    %4 = vector.load %arg1[%c1, %c0_4, %c0_5] : memref<4x30x25xf32, #tpu.memory_space<vmem>>, vector<1x30x25xf32>
    %5 = vector.shape_cast %4 : vector<1x30x25xf32> to vector<30x25xf32>
    %cst_6 = arith.constant dense<0.000000e+00> : vector<30x10xf32>
    %6 = tpu.matmul %5, %0, %cst_6 {dimension_numbers = #tpu.dot_dimension_numbers<[1], [0], [0], [1], [0, 0, 1, 1], [], []>} : vector<30x25xf32>, vector<25x10xf32>, vector<30x10xf32> -> vector<30x10xf32>
    %7 = arith.maximumf %3, %6 : vector<30x10xf32>
    %c2 = arith.constant 2 : index
    %c0_7 = arith.constant 0 : index
    %c0_8 = arith.constant 0 : index
    %8 = vector.load %arg1[%c2, %c0_7, %c0_8] : memref<4x30x25xf32, #tpu.memory_space<vmem>>, vector<1x30x25xf32>
    %9 = vector.shape_cast %8 : vector<1x30x25xf32> to vector<30x25xf32>
    %cst_9 = arith.constant dense<0.000000e+00> : vector<30x10xf32>
    %10 = tpu.matmul %9, %0, %cst_9 {dimension_numbers = #tpu.dot_dimension_numbers<[1], [0], [0], [1], [0, 0, 1, 1], [], []>} : vector<30x25xf32>, vector<25x10xf32>, vector<30x10xf32> -> vector<30x10xf32>
    %11 = arith.maximumf %7, %10 : vector<30x10xf32>
    %c3 = arith.constant 3 : index
    %c0_10 = arith.constant 0 : index
    %c0_11 = arith.constant 0 : index
    %12 = vector.load %arg1[%c3, %c0_10, %c0_11] : memref<4x30x25xf32, #tpu.memory_space<vmem>>, vector<1x30x25xf32>
    %13 = vector.shape_cast %12 : vector<1x30x25xf32> to vector<30x25xf32>
    %cst_12 = arith.constant dense<0.000000e+00> : vector<30x10xf32>
    %14 = tpu.matmul %13, %0, %cst_12 {dimension_numbers = #tpu.dot_dimension_numbers<[1], [0], [0], [1], [0, 0, 1, 1], [], []>} : vector<30x25xf32>, vector<25x10xf32>, vector<30x10xf32> -> vector<30x10xf32>
    %15 = arith.maximumf %11, %14 : vector<30x10xf32>
    %c0_13 = arith.constant 0 : index
    %c0_14 = arith.constant 0 : index
    %16 = vector.load %arg3[%c0_13, %c0_14] : memref<1x10xf32, #tpu.memory_space<vmem>>, vector<1x10xf32>
    %17 = vector.broadcast %16 : vector<1x10xf32> to vector<30x10xf32>
    %18 = arith.addf %15, %17 : vector<30x10xf32>
    %cst_15 = arith.constant 0.000000e+00 : f32
    %19 = vector.broadcast %cst_15 : f32 to vector<30x10xf32>
    %20 = arith.maximumf %18, %19 : vector<30x10xf32>
    %c0_16 = arith.constant 0 : index
    %c0_17 = arith.constant 0 : index
    %21 = vector.load %arg4[%c0_16, %c0_17] : memref<30x10xf32, #tpu.memory_space<vmem>>, vector<30x10xf32>
    tpu.vector_store %arg4[%c0_16, %c0_17], %20 {strides = array<i32>} : memref<30x10xf32, #tpu.memory_space<vmem>>, vector<30x10xf32>,
    return
  }
  func.func @transform_0(%arg0: i32) -> (i32, i32, i32) {
    %c0_i32 = arith.constant 0 : i32
    %c0_i32_0 = arith.constant 0 : i32
    %c0_i32_1 = arith.constant 0 : i32
    %c0_i32_2 = arith.constant 0 : i32
    return %c0_i32, %c0_i32_0, %c0_i32_1 : i32, i32, i32
  }
  func.func @transform_1(%arg0: i32) -> (i32, i32) {
    %c0_i32 = arith.constant 0 : i32
    %c0_i32_0 = arith.constant 0 : i32
    %c0_i32_1 = arith.constant 0 : i32
    return %c0_i32, %c0_i32_0 : i32, i32
  }
  func.func @transform_2(%arg0: i32) -> (i32, i32) {
    %c0_i32 = arith.constant 0 : i32
    %c0_i32_0 = arith.constant 0 : i32
    %c0_i32_1 = arith.constant 0 : i32
    return %c0_i32, %c0_i32_0 : i32, i32
  }
  func.func @transform_3(%arg0: i32) -> (i32, i32) {
    %c0_i32 = arith.constant 0 : i32
    %c0_i32_0 = arith.constant 0 : i32
    %c0_i32_1 = arith.constant 0 : i32
    return %c0_i32, %c0_i32_0 : i32, i32
  }
}

</mosaic_0001>

<bundles_post_ra>
// kernel: _conv_call.1
= control target key start
LH: loop header
LB: loop body
LE: loop exit
PB: predicated region body
PF: predicated region fallthrough
CT: control target
= control target key end

     0   :  { %vm35_vm0 = vcmask 1040384   ;;  %vm22_vm1 = vcmask 203776   ;;  %vm457_vm2 = vcmask 80896   ;;  %vm461_vm3 = vcmask 78848   ;;  %s710_s1 = inlined_call_operand.vmem [shape: f32[25,10], index: 1, kind: input, shape index: {}]   ;;  %s711_s0 = inlined_call_operand.vmem [shape: f32[4,30,25], index: 0, kind: input, shape index: {}]   ;;  %s712_s2 = inlined_call_operand.vmem [shape: f32[1,10], index: 2, kind: input, shape index: {}]   ;;  %s713_s3 = inlined_call_operand.vmem [shape: f32[30,10], index: 3, kind: output, shape index: {}]  }
   0x1   :  { %v17_v0 = vld [vmem:[%s710_s1 + $0x18] sm:$0x1]  ;;  %v16_v1 = vld [vmem:[%s710_s1 + $0x10] sm:$0xff]  ;;  %v15_v2 = vld [vmem:[%s710_s1 + $0x8] sm:$0xff] }
   0x2   :  { %532 = vmatprep.subr.msk.mxu0 %vm35_vm0, %v17_v0  ;;  %546 = vmatprep.subr.msk.mxu1 %vm35_vm0, %v17_v0  ;;  %v14_v3 = vld [vmem:[%s710_s1] sm:$0xff]  ;;  %v19_v6 = vld [vmem:[%s711_s0 + $0x8] sm:$0xff]  ;;  %v20_v8 = vld [vmem:[%s711_s0 + $0x10] sm:$0xff] }
   0x3   :  { %533 = vmatpush3.msk.msra.mxu0 %vm35_vm0, %v17_v0  ;;  %547 = vmatpush3.msk.msra.mxu1 %vm35_vm0, %v17_v0  ;;  %v18_v4 = vld [vmem:[%s711_s0] sm:$0xff]  ;;  %v473_v7 = vld [vmem:[%s711_s0 + $0x28] sm:$0xff]  ;;  %v474_v9 = vld [vmem:[%s711_s0 + $0x30] sm:$0xff] }
   0x4   :  { %534 = vmatprep.subr.mxu0 %v16_v1  ;;  %548 = vmatprep.subr.mxu1 %v16_v1  ;;  %v472_v5 = vld [vmem:[%s711_s0 + $0x20] sm:$0xff]  ;;  %v21_v10 = vld [vmem:[%s711_s0 + $0x18] sm:$0x3f]  ;;  %v482_v13 = vld [vmem:[%s711_s0 + $0x48] sm:$0xff] }
   0x5   :  { %535 = vmatpush3.msra.mxu0 %v16_v1  ;;  %549 = vmatpush3.msra.mxu1 %v16_v1  ;;  %v475_v11 = vld [vmem:[%s711_s0 + $0x38] sm:$0x3f]  ;;  %v481_v12 = vld [vmem:[%s711_s0 + $0x40] sm:$0xff]  ;;  %v483_v15 = vld [vmem:[%s711_s0 + $0x50] sm:$0xff] }
   0x6   :  { %536 = vmatprep.subr.mxu0 %v15_v2  ;;  %550 = vmatprep.subr.mxu1 %v15_v2  ;;  %v490_v14 = vld [vmem:[%s711_s0 + $0x60] sm:$0xff]  ;;  %v491_v16 = vld [vmem:[%s711_s0 + $0x68] sm:$0xff]  ;;  %v492_v17 = vld [vmem:[%s711_s0 + $0x70] sm:$0xff] }
   0x7   :  { %537 = vmatpush3.msra.mxu0 %v15_v2  ;;  %551 = vmatpush3.msra.mxu1 %v15_v2  ;;  %v484_v18 = vld [vmem:[%s711_s0 + $0x58] sm:$0x3f]  ;;  %v499_v33 = vld [vmem:[%s712_s2] ss:$0 sm:$0xff] }
   0x8   :  { %538 = vmatprep.subr.mxu0 %v14_v3  ;;  %552 = vmatprep.subr.mxu1 %v14_v3  ;;  %v493_v19 = vld [vmem:[%s711_s0 + $0x78] sm:$0x3f] }
   0x9   :  { %539 = vmatpush3.msra.mxu0 %v14_v3  ;;  %540 = vmatprep.mubr.msk.f32.mxu0 %vm22_vm1, %v18_v4 }
   0xa   :  { %553 = vmatpush3.msra.mxu1 %v14_v3  ;;  %554 = vmatprep.mubr.msk.f32.mxu1 %vm22_vm1, %v472_v5 }
   0xb   :  { %541 = vmatmul.mubr.msk.f32.vlgmr.msra.gmra.mxu0 %vm22_vm1, %v19_v6  ;;  %555 = vmatmul.mubr.msk.f32.vlgmr.msra.gmra.mxu1 %vm22_vm1, %v473_v7 }
   0xc   :  { %560 = vmatprep.subr.msk.mxu0 %vm35_vm0, %v17_v0  ;;  %574 = vmatprep.subr.msk.mxu1 %vm35_vm0, %v17_v0 }
   0xd   :  { %561 = vmatpush3.msk.msra.mxu0 %vm35_vm0, %v17_v0  ;;  %575 = vmatpush3.msk.msra.mxu1 %vm35_vm0, %v17_v0 }
   0xe   :  { %562 = vmatprep.subr.mxu0 %v16_v1  ;;  %543 = vmatprep.mubr.msk.f32.mxu0 %vm22_vm1, %v20_v8 }
   0xf   :  { %557 = vmatprep.mubr.msk.f32.mxu1 %vm22_vm1, %v474_v9  ;;  %563 = vmatpush3.msra.mxu0 %v16_v1 }
  0x10   :  { %576 = vmatprep.subr.mxu1 %v16_v1  ;;  %544 = vmatmul.mubr.msk.f32.gmra.mxu0 %vm22_vm1, %v21_v10 }
  0x11   :  { %558 = vmatmul.mubr.msk.f32.gmra.mxu1 %vm22_vm1, %v475_v11  ;;  %564 = vmatprep.subr.mxu0 %v15_v2 }
  0x12   :  { %577 = vmatpush3.msra.mxu1 %v16_v1  ;;  %565 = vmatpush3.msra.mxu0 %v15_v2 }
  0x13   :  { %578 = vmatprep.subr.mxu1 %v15_v2  ;;  %566 = vmatprep.subr.mxu0 %v14_v3 }
  0x14   :  { %579 = vmatpush3.msra.mxu1 %v15_v2  ;;  %567 = vmatpush3.msra.mxu0 %v14_v3 }
  0x15   :  { %568 = vmatprep.mubr.msk.f32.mxu0 %vm22_vm1, %v481_v12  ;;  %580 = vmatprep.subr.mxu1 %v14_v3 }
  0x16   :  { %569 = vmatmul.mubr.msk.f32.vlgmr.msra.gmra.mxu0 %vm22_vm1, %v482_v13  ;;  %581 = vmatpush3.msra.mxu1 %v14_v3 }
  0x17   :  { %582 = vmatprep.mubr.msk.f32.mxu1 %vm22_vm1, %v490_v14  ;;  %571 = vmatprep.mubr.msk.f32.mxu0 %vm22_vm1, %v483_v15 }
  0x18   :  { %583 = vmatmul.mubr.msk.f32.vlgmr.msra.gmra.mxu1 %vm22_vm1, %v491_v16 }
  0x19   :  { %585 = vmatprep.mubr.msk.f32.mxu1 %vm22_vm1, %v492_v17 }
  0x1a   :  { %572 = vmatmul.mubr.msk.f32.gmra.mxu0 %vm22_vm1, %v484_v18 }
  0x1c   :  { %586 = vmatmul.mubr.msk.f32.gmra.mxu1 %vm22_vm1, %v493_v19 }
  0xcb   :  { %v542_v20 = vpop.f32.mrf.mxu0  ;;  %v556_v21 = vpop.f32.mrf.mxu1 }
  0xcc   :  { %v227_v28 = vmax.f32 %v542_v20, %v556_v21 }
  0xcd   :  { %v105_v22 = vpop.f32.mrf.mxu0  ;;  %v207_v23 = vpop.f32.mrf.mxu1 }
  0xce   :  { %v226_v30 = vmax.f32 %v105_v22, %v207_v23 }
  0xd0   :  { %v545_v24 = vpop.f32.mrf.mxu0 }
  0xd1   :  { %v559_v25 = vpop.f32.mrf.mxu1 }
  0xd2   :  { %v115_v26 = vpop.f32.mrf.mxu0  ;;  %v229_v35 = vmax.f32 %v545_v24, %v559_v25 }
  0xd3   :  { %v217_v27 = vpop.f32.mrf.mxu1 }
  0xd4   :  { %v228_v40 = vmax.f32 %v115_v26, %v217_v27 }
  0xd6   :  { %v570_v29 = vpop.f32.mrf.mxu0 }
  0xd7   :  { %v333_v31 = vmax.f32 %v227_v28, %v570_v29 }
  0xd8   :  { %v584_v32 = vpop.f32.mrf.mxu1  ;;  %v313_v34 = vpop.f32.mrf.mxu0 }
  0xd9   :  { %v439_v36 = vmax.f32 %v333_v31, %v584_v32  ;;  %v332_v37 = vmax.f32 %v226_v30, %v313_v34 }
  0xda   :  { %v419_v38 = vpop.f32.mrf.mxu1  ;;  %v573_v39 = vpop.f32.mrf.mxu0 }
  0xdb   :  { %v450_v41 = vadd.f32 %v499_v33, %v439_v36  ;;  %v438_v42 = vmax.f32 %v332_v37, %v419_v38  ;;  %v335_v43 = vmax.f32 %v229_v35, %v573_v39 }
  0xdc   :  { %v587_v44 = vpop.f32.mrf.mxu1  ;;  %v323_v45 = vpop.f32.mrf.mxu0 }
  0xdd   :  { %v454_v46 = vmax.f32 %v450_v41, 0.0  ;;  %v449_v47 = vadd.f32 %v499_v33, %v438_v42  ;;  %v441_v48 = vmax.f32 %v335_v43, %v587_v44  ;;  %v334_v49 = vmax.f32 %v228_v40, %v323_v45 }
  0xde   :  { %v429_v50 = vpop.f32.mrf.mxu1 }
  0xdf   :  { %459 = vst.msk [vmem:[%s713_s3 + $0x8] sm:$0xff] %vm457_vm2, %v454_v46  ;;  %v453_v51 = vmax.f32 %v449_v47, 0.0  ;;  %v452_v52 = vadd.f32 %v499_v33, %v441_v48  ;;  %v440_v53 = vmax.f32 %v334_v49, %v429_v50 }
  0xe1   :  { %458 = vst.msk [vmem:[%s713_s3] sm:$0xff] %vm457_vm2, %v453_v51  ;;  %v456_v54 = vmax.f32 %v452_v52, 0.0  ;;  %v451_v55 = vadd.f32 %v499_v33, %v440_v53 }
  0xe3   :  { %462 = vst.msk [vmem:[%s713_s3 + $0x18] sm:$0x3f] %vm461_vm3, %v456_v54  ;;  %v455_v56 = vmax.f32 %v451_v55, 0.0 }
  0xe5   :  { %460 = vst.msk [vmem:[%s713_s3 + $0x10] sm:$0xff] %vm457_vm2, %v455_v56 }

</bundles_post_ra>
